<compile_context>
chip_gen: v5e
topology: v5e:2x2
jax: 0.10.0
libtpu: 0.0.40
codegen_flags: <defaults>
</compile_context>

<pallas_src>
import jax
import jax.numpy as jnp
from jax.experimental import pallas as pl
from jax.experimental.pallas import tpu as pltpu


_MAX_TB = 4096  # max rows per grid step (multiple of 8)


def _round_up(x, m):
    return ((x + m - 1) // m) * m


def _pick_batch_tile(batch):
    """Batch-tile selection.

    * batch <= _MAX_TB: one block equal to the full batch dim (always layout-legal,
      no pipeline prologue/epilogue waste).
    * larger batches: at least 4 grid steps (>= 2 per v7x TensorCore so the
      double-buffered pipeline actually overlaps), TB rounded up to a multiple
      of 8 and sized so the last tile isn't mostly padding.
    """
    if batch <= _MAX_TB:
        return batch
    n_steps = max(4, pl.cdiv(batch, _MAX_TB))
    return _round_up(pl.cdiv(batch, n_steps), 8)


def _make_mlp_kernel(feats):
    """Kernel over one batch tile: pack modalities -> x @ W1 + b1 -> ReLU -> @ W2 + b2."""
    n = len(feats)

    def kernel(*refs):
        x_refs = refs[:n]
        w1_ref, b1_ref, w2_ref, b2_ref, o_ref = refs[n:n + 5]

        if n == 1:
            # Single (possibly pre-concatenated / stacked-and-flattened) input:
            # feed the MXU directly, no scratch pass needed.
            lhs = x_refs[0][...].astype(jnp.bfloat16)
        else:
            # Pack the per-modality tiles into one lane-contiguous bf16 LHS so
            # layer 1 is a single K=D_in MXU pass instead of n partial dots.
            xcat_ref = refs[n + 5]
            off = 0
            for x_ref, f in zip(x_refs, feats):
                xcat_ref[:, off:off + f] = x_ref[...].astype(jnp.bfloat16)
                off += f
            lhs = xcat_ref[...]

        # Layer 1: bf16 operands, f32 MXU accumulation; bias/ReLU in f32 (v5e-safe).
        h = jnp.dot(lhs, w1_ref[...], preferred_element_type=jnp.float32)
        h = jnp.maximum(h + b1_ref[...], 0.0)

        # Layer 2: bf16 MXU matmul, f32 accumulate, f32 bias, downcast only at store.
        o = jnp.dot(h.astype(jnp.bfloat16), w2_ref[...],
                    preferred_element_type=jnp.float32)
        o_ref[...] = (o + b2_ref[...]).astype(o_ref.dtype)

    return kernel


def mlp_forward(input_list, params, concat=True, out_dtype=jnp.float32):
    """Mirror of MLP.forward: fuse modality merge + Linear -> ReLU -> Linear."""
    w1, b1, w2, b2 = params  # w1:(D_in,H) bf16, b1:(1,H) f32, w2:(H,D_out) bf16, b2:(1,D_out) f32

    if concat:
        xs = list(input_list)
        out_leading = None
    else:
        # torch.stack adds a leading modality axis; nn.Linear acts on the last
        # dim, so w1 must be built for the per-modality feature width.  Flatten
        # leading dims for the kernel and restore them afterwards.
        stacked = jnp.stack(input_list)               # (M, B, F)
        xs = [stacked.reshape(-1, stacked.shape[-1])]
        out_leading = stacked.shape[:-1]

    batch = int(xs[0].shape[0])
    feats = [int(x.shape[1]) for x in xs]
    d_in = sum(feats)
    assert w1.shape[0] == d_in, (
        "w1 input width must match the merged feature width "
        f"(got w1.shape[0]={w1.shape[0]}, merged={d_in})")
    hidden = int(w1.shape[1])
    d_out = int(w2.shape[1])
    n = len(xs)

    tb = _pick_batch_tile(batch)
    grid = (pl.cdiv(batch, tb),)

    in_specs = []
    # Per-modality activations: tiled along the batch grid axis (bf16 preferred).
    for f in feats:
        in_specs.append(pl.BlockSpec((tb, f), lambda i: (i, 0)))
    # Weights / biases: full arrays, constant block index -> VMEM-resident.
    in_specs.append(pl.BlockSpec((d_in, hidden), lambda i: (0, 0)))
    in_specs.append(pl.BlockSpec((1, hidden), lambda i: (0, 0)))
    in_specs.append(pl.BlockSpec((hidden, d_out), lambda i: (0, 0)))
    in_specs.append(pl.BlockSpec((1, d_out), lambda i: (0, 0)))

    out_specs = pl.BlockSpec((tb, d_out), lambda i: (i, 0))

    # Scratch only needed when there is more than one modality to pack.
    scratch_shapes = (
        [pltpu.VMEM((tb, d_in), jnp.bfloat16)] if n > 1 else [])

    flops = 2 * batch * (d_in * hidden + hidden * d_out)
    bytes_accessed = (
        sum(x.size * x.dtype.itemsize for x in xs)
        + w1.size * w1.dtype.itemsize + w2.size * w2.dtype.itemsize
        + b1.size * b1.dtype.itemsize + b2.size * b2.dtype.itemsize
        + batch * d_out * jnp.dtype(out_dtype).itemsize
    )

    out = pl.pallas_call(
        _make_mlp_kernel(feats),
        out_shape=jax.ShapeDtypeStruct((batch, d_out), out_dtype),
        grid_spec=pl.GridSpec(
            grid=grid,
            in_specs=in_specs,
            out_specs=out_specs,
            scratch_shapes=scratch_shapes,
        ),
        compiler_params=pltpu.CompilerParams(
            # Independent batch tiles -> "parallel" (shards across v7x's 2 TCs).
            dimension_semantics=("parallel",),
        ),
        cost_estimate=pl.CostEstimate(
            flops=flops, transcendentals=0, bytes_accessed=bytes_accessed),
    )(*xs, w1, b1, w2, b2)

    if out_leading is not None:
        out = out.reshape(*out_leading, d_out)
    return out


def init_params(key, d_in, hidden, d_out):
    """Deterministic synthetic parameters.  Weights bf16 (MXU-native), biases f32."""
    k1, k2, k3, k4 = jax.random.split(key, 4)
    w1 = (jax.random.normal(k1, (d_in, hidden), jnp.float32)
          * (2.0 / d_in) ** 0.5).astype(jnp.bfloat16)
    b1 = jax.random.normal(k2, (1, hidden), jnp.float32) * 0.01
    w2 = (jax.random.normal(k3, (hidden, d_out), jnp.float32)
          * (2.0 / hidden) ** 0.5).astype(jnp.bfloat16)
    b2 = jax.random.normal(k4, (1, d_out), jnp.float32) * 0.01
    return (w1, b1, w2, b2)


def _reference_bf16(input_list, params):
    """Plain-JAX reference with the same bf16 operand rounding as the kernel."""
    w1, b1, w2, b2 = params
    x = jnp.concatenate([a.astype(jnp.bfloat16) for a in input_list], axis=1)
    h = jnp.dot(x, w1, preferred_element_type=jnp.float32) + b1
    h = jnp.maximum(h, 0.0).astype(jnp.bfloat16)
    return jnp.dot(h, w2, preferred_element_type=jnp.float32) + b2


def _reference_f32(input_list, params):
    """Full-f32 reference (true nn.Linear semantics) for a looser accuracy check."""
    w1, b1, w2, b2 = params
    x = jnp.concatenate([a.astype(jnp.float32) for a in input_list], axis=1)
    h = jnp.maximum(x @ w1.astype(jnp.float32) + b1, 0.0)
    return h @ w2.astype(jnp.float32) + b2


def _reference_f32_stacked(input_list, params):
    """f32 reference for the concat=False (torch.stack) path."""
    w1, b1, w2, b2 = params
    x = jnp.stack([a.astype(jnp.float32) for a in input_list])   # (M, B, F)
    h = jnp.maximum(x @ w1.astype(jnp.float32) + b1, 0.0)
    return h @ w2.astype(jnp.float32) + b2


if __name__ == "__main__":
    key = jax.random.PRNGKey(0)
    k1, k2, k3, k4, kp, kq = jax.random.split(key, 6)

    feat = 64        # per-modality feature width
    hidden = 128     # lane-aligned hidden width
    d_out = 8
    params = init_params(kp, 2 * feat, hidden, d_out)

    # --- small batch, concat=True: single full-batch block -----------------
    x1 = jax.random.normal(k1, (2, feat), jnp.float32).astype(jnp.bfloat16)
    x2 = jax.random.normal(k2, (2, feat), jnp.float32).astype(jnp.bfloat16)
    out_small = jax.block_until_ready(mlp_forward([x1, x2], params, concat=True))
    assert out_small.shape == (2, d_out)
    assert jnp.allclose(out_small, _reference_bf16([x1, x2], params),
                        atol=1e-4, rtol=1e-3)
    assert jnp.allclose(out_small, _reference_f32([x1, x2], params),
                        atol=3e-2, rtol=3e-2)

    # --- larger, non-multiple-of-8 batch: tiled / double-buffered / parallel grid
    B = 8200
    y1 = jax.random.normal(k3, (B, feat), jnp.float32).astype(jnp.bfloat16)
    y2 = jax.random.normal(k4, (B, feat), jnp.float32).astype(jnp.bfloat16)
    out_big = jax.block_until_ready(mlp_forward([y1, y2], params, concat=True))
    assert out_big.shape == (B, d_out)
    assert jnp.allclose(out_big, _reference_bf16([y1, y2], params),
                        atol=1e-4, rtol=1e-3)
    assert jnp.allclose(out_big, _reference_f32([y1, y2], params),
                        atol=3e-2, rtol=3e-2)

    # --- concat=False (torch.stack) path with per-modality-width weights ----
    params_stack = init_params(kq, feat, hidden, d_out)
    out_stack = jax.block_until_ready(
        mlp_forward([x1, x2], params_stack, concat=False))
    assert out_stack.shape == (2, 2, d_out)
    assert jnp.allclose(out_stack, _reference_f32_stacked([x1, x2], params_stack),
                        atol=3e-2, rtol=3e-2)

    print("KERNEL_OK")
</pallas_src>

<mosaic_0001>
module attributes {stable_mosaic.version = 11 : i64} {
  func.func @kernel(%arg0: i32, %arg1: memref<2x64xbf16, #tpu.memory_space<vmem>>, %arg2: memref<2x64xbf16, #tpu.memory_space<vmem>>, %arg3: memref<128x128xbf16, #tpu.memory_space<vmem>>, %arg4: memref<1x128xf32, #tpu.memory_space<vmem>>, %arg5: memref<128x8xbf16, #tpu.memory_space<vmem>>, %arg6: memref<1x8xf32, #tpu.memory_space<vmem>>, %arg7: memref<2x8xf32, #tpu.memory_space<vmem>>, %arg8: memref<2x128xbf16, #tpu.memory_space<vmem>>) attributes {dimension_semantics = [#tpu.dimension_semantics<parallel>], iteration_bounds = array<i64: 1>, scalar_prefetch = 0 : i64, scratch_operands = 1 : i64, tpu.core_type = #tpu.core_type<tc>, window_params = [{transform_indices = @transform_0, window_bounds = array<i64: 2, 64>}, {transform_indices = @transform_1, window_bounds = array<i64: 2, 64>}, {pipeline_mode = #tpu.pipeline_mode<synchronous>, transform_indices = @transform_2, window_bounds = array<i64: 128, 128>}, {pipeline_mode = #tpu.pipeline_mode<synchronous>, transform_indices = @transform_3, window_bounds = array<i64: 1, 128>}, {pipeline_mode = #tpu.pipeline_mode<synchronous>, transform_indices = @transform_4, window_bounds = array<i64: 128, 8>}, {pipeline_mode = #tpu.pipeline_mode<synchronous>, transform_indices = @transform_5, window_bounds = array<i64: 1, 8>}, {transform_indices = @transform_6, window_bounds = array<i64: 2, 8>}]} {
    %c0 = arith.constant 0 : index
    %c0_0 = arith.constant 0 : index
    %0 = vector.load %arg1[%c0, %c0_0] : memref<2x64xbf16, #tpu.memory_space<vmem>>, vector<2x64xbf16>
    %c0_1 = arith.constant 0 : index
    %c0_2 = arith.constant 0 : index
    %1 = vector.load %arg8[%c0_1, %c0_2] : memref<2x128xbf16, #tpu.memory_space<vmem>>, vector<2x64xbf16>
    tpu.vector_store %arg8[%c0_1, %c0_2], %0 {strides = array<i32>} : memref<2x128xbf16, #tpu.memory_space<vmem>>, vector<2x64xbf16>,
    %c0_3 = arith.constant 0 : index
    %c0_4 = arith.constant 0 : index
    %2 = vector.load %arg2[%c0_3, %c0_4] : memref<2x64xbf16, #tpu.memory_space<vmem>>, vector<2x64xbf16>
    %c0_5 = arith.constant 0 : index
    %c64 = arith.constant 64 : index
    %3 = vector.load %arg8[%c0_5, %c64] : memref<2x128xbf16, #tpu.memory_space<vmem>>, vector<2x64xbf16>
    tpu.vector_store %arg8[%c0_5, %c64], %2 {strides = array<i32>} : memref<2x128xbf16, #tpu.memory_space<vmem>>, vector<2x64xbf16>,
    %c0_6 = arith.constant 0 : index
    %c0_7 = arith.constant 0 : index
    %4 = vector.load %arg8[%c0_6, %c0_7] : memref<2x128xbf16, #tpu.memory_space<vmem>>, vector<2x128xbf16>
    %c0_8 = arith.constant 0 : index
    %c0_9 = arith.constant 0 : index
    %5 = vector.load %arg3[%c0_8, %c0_9] : memref<128x128xbf16, #tpu.memory_space<vmem>>, vector<128x128xbf16>
    %cst = arith.constant dense<0.000000e+00> : vector<2x128xf32>
    %6 = tpu.matmul %4, %5, %cst {dimension_numbers = #tpu.dot_dimension_numbers<[1], [0], [0], [1], [0, 0, 1, 1], [], []>} : vector<2x128xbf16>, vector<128x128xbf16>, vector<2x128xf32> -> vector<2x128xf32>
    %c0_10 = arith.constant 0 : index
    %c0_11 = arith.constant 0 : index
    %7 = vector.load %arg4[%c0_10, %c0_11] : memref<1x128xf32, #tpu.memory_space<vmem>>, vector<1x128xf32>
    %8 = vector.broadcast %7 : vector<1x128xf32> to vector<2x128xf32>
    %9 = arith.addf %6, %8 : vector<2x128xf32>
    %cst_12 = arith.constant 0.000000e+00 : f32
    %10 = vector.broadcast %cst_12 : f32 to vector<2x128xf32>
    %11 = arith.maximumf %9, %10 : vector<2x128xf32>
    %12 = arith.truncf %11 : vector<2x128xf32> to vector<2x128xbf16>
    %c0_13 = arith.constant 0 : index
    %c0_14 = arith.constant 0 : index
    %13 = vector.load %arg5[%c0_13, %c0_14] : memref<128x8xbf16, #tpu.memory_space<vmem>>, vector<128x8xbf16>
    %cst_15 = arith.constant dense<0.000000e+00> : vector<2x8xf32>
    %14 = tpu.matmul %12, %13, %cst_15 {dimension_numbers = #tpu.dot_dimension_numbers<[1], [0], [0], [1], [0, 0, 1, 1], [], []>} : vector<2x128xbf16>, vector<128x8xbf16>, vector<2x8xf32> -> vector<2x8xf32>
    %c0_16 = arith.constant 0 : index
    %c0_17 = arith.constant 0 : index
    %15 = vector.load %arg6[%c0_16, %c0_17] : memref<1x8xf32, #tpu.memory_space<vmem>>, vector<1x8xf32>
    %16 = vector.broadcast %15 : vector<1x8xf32> to vector<2x8xf32>
    %17 = arith.addf %14, %16 : vector<2x8xf32>
    %c0_18 = arith.constant 0 : index
    %c0_19 = arith.constant 0 : index
    %18 = vector.load %arg7[%c0_18, %c0_19] : memref<2x8xf32, #tpu.memory_space<vmem>>, vector<2x8xf32>
    tpu.vector_store %arg7[%c0_18, %c0_19], %17 {strides = array<i32>} : memref<2x8xf32, #tpu.memory_space<vmem>>, vector<2x8xf32>,
    return
  }
  func.func @transform_0(%arg0: i32) -> (i32, i32) {
    %c0_i32 = arith.constant 0 : i32
    %c0_i32_0 = arith.constant 0 : i32
    return %arg0, %c0_i32 : i32, i32
  }
  func.func @transform_1(%arg0: i32) -> (i32, i32) {
    %c0_i32 = arith.constant 0 : i32
    %c0_i32_0 = arith.constant 0 : i32
    return %arg0, %c0_i32 : i32, i32
  }
  func.func @transform_2(%arg0: i32) -> (i32, i32) {
    %c0_i32 = arith.constant 0 : i32
    %c0_i32_0 = arith.constant 0 : i32
    %c0_i32_1 = arith.constant 0 : i32
    return %c0_i32, %c0_i32_0 : i32, i32
  }
  func.func @transform_3(%arg0: i32) -> (i32, i32) {
    %c0_i32 = arith.constant 0 : i32
    %c0_i32_0 = arith.constant 0 : i32
    %c0_i32_1 = arith.constant 0 : i32
    return %c0_i32, %c0_i32_0 : i32, i32
  }
  func.func @transform_4(%arg0: i32) -> (i32, i32) {
    %c0_i32 = arith.constant 0 : i32
    %c0_i32_0 = arith.constant 0 : i32
    %c0_i32_1 = arith.constant 0 : i32
    return %c0_i32, %c0_i32_0 : i32, i32
  }
  func.func @transform_5(%arg0: i32) -> (i32, i32) {
    %c0_i32 = arith.constant 0 : i32
    %c0_i32_0 = arith.constant 0 : i32
    %c0_i32_1 = arith.constant 0 : i32
    return %c0_i32, %c0_i32_0 : i32, i32
  }
  func.func @transform_6(%arg0: i32) -> (i32, i32) {
    %c0_i32 = arith.constant 0 : i32
    %c0_i32_0 = arith.constant 0 : i32
    return %arg0, %c0_i32 : i32, i32
  }
}

</mosaic_0001>

<bundles_post_ra>
// kernel: tpu_custom_call.1
= control target key start
LH: loop header
LB: loop body
LE: loop exit
PB: predicated region body
PF: predicated region fallthrough
CT: control target
= control target key end

     0   :  { %vm25_vm0 = vcmask 516096   ;;  %s327_s25 = smov 64   ;;  %s427_s0 = inlined_call_operand.vmem [shape: bf16[2,64], index: 0, kind: input, shape index: {}]   ;;  %s428_s1 = inlined_call_operand.vmem [shape: bf16[2,64], index: 1, kind: input, shape index: {}]   ;;  %s429_s2 = inlined_call_operand.vmem [shape: bf16[128,128], index: 2, kind: input, shape index: {}]   ;;  %s430_s3 = inlined_call_operand.vmem [shape: f32[1,128], index: 3, kind: input, shape index: {}]   ;;  %s431_s4 = inlined_call_operand.vmem [shape: bf16[128,8], index: 4, kind: input, shape index: {}]   ;;  %s432_s5 = inlined_call_operand.vmem [shape: f32[1,8], index: 5, kind: input, shape index: {}]   ;;  %s433_s6 = inlined_call_operand.hbm [shape: f32[2,8], index: 6, kind: output, shape index: {}]  }
   0x1   :  { %v27_v0 = vld [vmem:[%s428_s1] sm:$0x1]  ;;  %v288_v1 = vld [vmem:[%s429_s2 + $0x38] sm:$0xff]  ;;  %v287_v2 = vld [vmem:[%s429_s2 + $0x30] sm:$0xff] }
   0x2   :  { %29 = vrot.lane.b32.xlu0 %v27_v0, %s327_s25  ;;  %103 = vmatpush.bf16.msra.mxu0 %v288_v1  ;;  %v24_v3 = vld [vmem:[%s427_s0] sm:$0x1] }
   0x3   :  { %26 = vst.msk [vmem:[#allocation2] sm:$0x1] %vm25_vm0, %v24_v3 }
   0x4   :  { %11 = vsyncpa [#allocation4], 0  ;;  %v286_v4 = vld [vmem:[%s429_s2 + $0x28] sm:$0xff]  ;;  %v285_v5 = vld [vmem:[%s429_s2 + $0x20] sm:$0xff]  ;;  %vm32_vm1 = vcmask 1040896   ;;  %s328_s10 = smov [#allocation3]  }
   0x5   :  { %v284_v6 = vld [vmem:[%s429_s2 + $0x18] sm:$0xff]  ;;  %v283_v7 = vld [vmem:[%s429_s2 + $0x10] sm:$0xff]  ;;  %v282_v8 = vld [vmem:[%s429_s2 + $0x8] sm:$0xff]  ;;  %s206_s11 = sshll.u32 %s328_s10, 4  ;;  %vm199_vm2 = vcmask 58368   ;;  %s207_s11 = int_to_ptr.vmem [resolvable:$true] %s206_s11 }
   0x6   :  { %104 = vmatpush.bf16.msra.mxu0 %v287_v2  ;;  %v281_v9 = vld [vmem:[%s429_s2] sm:$0xff]  ;;  %v296_v10 = vld [vmem:[%s431_s4 + $0x38] sm:$0xff]  ;;  %v295_v11 = vld [vmem:[%s431_s4 + $0x30] sm:$0xff] }
   0x7   :  { %186 = vmatpush.bf16.msra.mxu1 %v296_v10  ;;  %v294_v12 = vld [vmem:[%s431_s4 + $0x28] sm:$0xff]  ;;  %v293_v13 = vld [vmem:[%s431_s4 + $0x20] sm:$0xff]  ;;  %v292_v14 = vld [vmem:[%s431_s4 + $0x18] sm:$0xff] }
   0x8   :  { %v291_v15 = vld [vmem:[%s431_s4 + $0x10] sm:$0xff]  ;;  %v290_v18 = vld [vmem:[%s431_s4 + $0x8] sm:$0xff]  ;;  %v289_v19 = vld [vmem:[%s431_s4] sm:$0xff]  ;;  %s208_s4 = sshll.u32 %s433_s6, 4  ;;  %s209_s4 = int_to_ptr.hbm [resolvable:$true] %s208_s4 }
   0x9   :  { %v299_v20 = vld [vmem:[%s430_s3] ss:$0 sm:$0xff] }
   0xa   :  { %105 = vmatpush.bf16.msra.mxu0 %v286_v4  ;;  %v300_v26 = vld [vmem:[%s432_s5] ss:$0 sm:$0xff] }
   0xb   :  { %187 = vmatpush.bf16.msra.mxu1 %v295_v11 }
   0xe   :  { %106 = vmatpush.bf16.msra.mxu0 %v285_v5 }
   0xf   :  { %188 = vmatpush.bf16.msra.mxu1 %v294_v12 }
  0x12   :  { %107 = vmatpush.bf16.msra.mxu0 %v284_v6 }
  0x13   :  { %189 = vmatpush.bf16.msra.mxu1 %v293_v13 }
  0x16   :  { %108 = vmatpush.bf16.msra.mxu0 %v283_v7 }
  0x17   :  { %190 = vmatpush.bf16.msra.mxu1 %v292_v14 }
  0x1a   :  { %109 = vmatpush.bf16.msra.mxu0 %v282_v8 }
  0x1b   :  { %191 = vmatpush.bf16.msra.mxu1 %v291_v15 }
  0x1e   :  { %110 = vmatpush.bf16.msra.mxu0 %v281_v9 }
  0x1f   :  { %192 = vmatpush.bf16.msra.mxu1 %v290_v18 }
  0x23   :  { %193 = vmatpush.bf16.msra.mxu1 %v289_v19 }
  0x74   :  { %v30_v16 = vpop.permute.xlu0 %29 }
  0x75   :  { %33 = vst.msk [vmem:[#allocation2] sm:$0x1] %vm32_vm1, %v30_v16 }
  0x7c   :  { %v34_v17 = vld [vmem:[#allocation2] sm:$0x1] }
  0x7d   :  { %111 = vmatmul.bf16.vlgmr.msra.gmra.mxu0 %v34_v17 }
  0xfa   :  { %v112_v21 = vpop.f32.mrf.mxu0 }
  0xfb   :  { %v113_v22 = vadd.f32 %v299_v20, %v112_v21 }
  0xfd   :  { %v116_v23 = vmax.f32 %v113_v22, 0.0 }
  0xff   :  { %v117_v24 = vpack.c.bf16 %v116_v23, %v116_v23 }
 0x101   :  { %194 = vmatmul.bf16.vlgmr.msra.gmra.mxu1 %v117_v24 }
 0x102   :  { %v114_v25 = vpop.f32.mrf.mxu0 }
 0x17e   :  { %v195_v27 = vpop.f32.mrf.mxu1 }
 0x17f   :  { %v196_v28 = vadd.f32 %v300_v26, %v195_v27 }
 0x181   :  { %200 = vst.msk [vmem:[#allocation3] sm:$0x3] %vm199_vm2, %v196_v28 }
 0x182   :  { %211 = dma.vmem_to_hbm [thread:$0]  %s207_s11, 32, %s209_s4, [#allocation4]  }
 0x186   :  { %v197_v29 = vpop.f32.mrf.mxu1 }
 0x187   :  { %325 = dma.done.wait [#allocation4], 32  }
 0x188   :  { %326 = vsyncadd [#allocation4], 4294967264 }
 0x189   :  { %216 = vsyncpa [#allocation4], 1 }

</bundles_post_ra>
